<compile_context>
chip_gen: v7x
topology: tpu7x:2x2x1
jax: 0.10.0
libtpu: 0.0.40
codegen_flags: <defaults>
</compile_context>

<pallas_src>
import functools

import jax
import jax.numpy as jnp
from jax.experimental import pallas as pl
from jax.experimental.pallas import tpu as pltpu

_EPS = 1e-8            # torch.nn.functional.cosine_similarity default eps
_EPS_SQ = _EPS * _EPS  # clamp applied to |x|^2 * |y|^2 (matches ATen's clamp_min(eps^2))


def _round_up(x, m):
    return ((x + m - 1) // m) * m


def _cdiv(a, b):
    return (a + b - 1) // b


def _pair_distance_kernel(a_ref, p_ref, n_ref, poss_ref, negs_ref,
                          ap_acc, an_acc, aa_acc, pp_acc, nn_acc,
                          *, feat, td):
    """Streams (tb, td) tiles; lane-dense per-row partial sums in VMEM scratch."""
    di = pl.program_id(1)

    @pl.when(di == 0)
    def _init():
        ap_acc[...] = jnp.zeros_like(ap_acc)
        an_acc[...] = jnp.zeros_like(an_acc)
        aa_acc[...] = jnp.zeros_like(aa_acc)
        pp_acc[...] = jnp.zeros_like(pp_acc)
        nn_acc[...] = jnp.zeros_like(nn_acc)

    a = a_ref[...]
    p = p_ref[...]
    n = n_ref[...]
    if a.dtype != jnp.float32:          # only cast when inputs are not f32
        a = a.astype(jnp.float32)
        p = p.astype(jnp.float32)
        n = n.astype(jnp.float32)

    if feat % td != 0:
        # D-tail: zero the garbage lanes of the partial feature block in-kernel
        # instead of materializing padded copies of the inputs in HBM.
        col = jax.lax.broadcasted_iota(jnp.int32, a.shape, 1) + di * td
        live = col < feat
        zero = jnp.zeros_like(a)
        a = jnp.where(live, a, zero)
        p = jnp.where(live, p, zero)
        n = jnp.where(live, n, zero)

    # Lane-dense accumulation: fold the (tb, td) products into (tb, 128) with
    # lane-aligned VPU adds only; the single XLU cross-lane reduce per quantity
    # is deferred to the per-row-block epilogue below.
    n_groups = td // 128

    def _fold128(x):
        r = x[:, 0:128]
        for g in range(1, n_groups):
            r = r + x[:, g * 128:(g + 1) * 128]
        return r

    ap_acc[...] += _fold128(a * p)
    an_acc[...] += _fold128(a * n)
    aa_acc[...] += _fold128(a * a)
    pp_acc[...] += _fold128(p * p)
    nn_acc[...] += _fold128(n * n)

    @pl.when(di == pl.num_programs(1) - 1)
    def _finish():
        ap = jnp.sum(ap_acc[...], axis=-1, keepdims=True)
        an = jnp.sum(an_acc[...], axis=-1, keepdims=True)
        aa = jnp.sum(aa_acc[...], axis=-1, keepdims=True)
        pp = jnp.sum(pp_acc[...], axis=-1, keepdims=True)
        nn = jnp.sum(nn_acc[...], axis=-1, keepdims=True)
        # F.cosine_similarity clamps the *product* of norms at eps:
        #   cos = dot * rsqrt(max(|x|^2 * |y|^2, eps^2))      (EUP rsqrt, no divide)
        poss_ref[...] = 1.0 - ap * jax.lax.rsqrt(jnp.maximum(aa * pp, _EPS_SQ))
        negs_ref[...] = 1.0 - an * jax.lax.rsqrt(jnp.maximum(aa * nn, _EPS_SQ))


def _threshold_loss_kernel(poss_ref, negs_ref, o_ref, *, margin, batch):
    """Hard-pair selection thresholds + squared / squared-hinge sums -> scalar."""
    poss = poss_ref[...]                        # (b_pad, 1) f32
    negs = negs_ref[...]
    row = jax.lax.broadcasted_iota(jnp.int32, poss.shape, 0)
    valid = row < batch                         # garbage B-tail rows masked here

    if batch > 1:   # static branch, mirrors the PyTorch `len(...) > 1`
        neg_thresh = jnp.max(jnp.where(valid, poss, -jnp.inf))   # poss.max()
        pos_thresh = jnp.min(jnp.where(valid, negs, jnp.inf))    # negs.min()
    else:
        # Literal spec: negs threshold = negs.mean(), poss threshold = poss.mean()
        # (strict inequalities make the batch==1 loss identically zero).
        neg_thresh = jnp.sum(jnp.where(valid, negs, 0.0)) / batch
        pos_thresh = jnp.sum(jnp.where(valid, poss, 0.0)) / batch

    # Strict inequalities kept exactly as in the PyTorch reference.
    pos_mask = valid & (poss > pos_thresh)
    neg_mask = valid & (negs < neg_thresh)

    positive_loss = jnp.sum(jnp.where(pos_mask, poss * poss, 0.0))
    hinge = jnp.maximum(margin - negs, 0.0)
    negative_loss = jnp.sum(jnp.where(neg_mask, hinge * hinge, 0.0))
    o_ref[0] = positive_loss + negative_loss


def online_contrastive_loss(anchor, positive, negative, *, margin=0.5):
    """anchor/positive/negative: (B, D) embeddings. Returns scalar f32 loss."""
    B, D = anchor.shape
    itemsize = int(jnp.dtype(anchor.dtype).itemsize)

    # Tile selection (no input padding):
    #   td: lane-aligned multiple of 128, payload-constant across dtypes.
    #   tb: multiple of 8, capped at 512.
    base_td = 512 * max(1, 4 // itemsize)
    td = min(_round_up(D, 128), base_td)
    nd = _cdiv(D, td)

    tb = min(_round_up(B, 8), 512)
    nb = _cdiv(B, tb)
    b_pad = nb * tb

    dist_kernel = functools.partial(_pair_distance_kernel, feat=D, td=td)
    poss, negs = pl.pallas_call(
        dist_kernel,
        out_shape=(jax.ShapeDtypeStruct((b_pad, 1), jnp.float32),
                   jax.ShapeDtypeStruct((b_pad, 1), jnp.float32)),
        grid_spec=pltpu.PrefetchScalarGridSpec(
            num_scalar_prefetch=0,
            grid=(nb, nd),
            in_specs=[pl.BlockSpec((tb, td), lambda bi, di: (bi, di))
                      for _ in range(3)],
            out_specs=[pl.BlockSpec((tb, 1), lambda bi, di: (bi, 0)),
                       pl.BlockSpec((tb, 1), lambda bi, di: (bi, 0))],
            scratch_shapes=[pltpu.VMEM((tb, 128), jnp.float32)
                            for _ in range(5)],
        ),
        compiler_params=pltpu.CompilerParams(
            # Row-blocks are fully independent (per-block scratch + outputs),
            # so the streaming pass can split across both v7x TensorCores.
            dimension_semantics=("parallel", "arbitrary")),
        cost_estimate=pl.CostEstimate(
            flops=10 * B * D,
            transcendentals=2 * B,
            bytes_accessed=3 * B * D * itemsize + 8 * b_pad),
    )(anchor, positive, negative)

    # TODO(synk): for very large B (>~64K rows) keep poss/negs lane-dense
    #             ((b_pad/128, 128)) and reduce hierarchically in this kernel.
    loss = pl.pallas_call(
        functools.partial(_threshold_loss_kernel,
                          margin=float(margin), batch=B),
        out_shape=jax.ShapeDtypeStruct((1,), jnp.float32),
        grid=(1,),
        in_specs=[pl.BlockSpec((b_pad, 1), lambda i: (0, 0)),
                  pl.BlockSpec((b_pad, 1), lambda i: (0, 0))],
        out_specs=pl.BlockSpec(memory_space=pltpu.MemorySpace.SMEM),
    )(poss, negs)
    return loss[0]


def _reference(anchor, positive, negative, margin=0.5):
    # pure-JAX reference mirroring the PyTorch module
    def cos(x, y):
        dot = jnp.sum(x * y, axis=-1)
        nx = jnp.sum(x * x, axis=-1)
        ny = jnp.sum(y * y, axis=-1)
        return dot / jnp.sqrt(jnp.maximum(nx * ny, _EPS_SQ))

    poss = 1.0 - cos(anchor, positive)
    negs = 1.0 - cos(anchor, negative)
    B = poss.shape[0]
    neg_thresh = jnp.max(poss) if B > 1 else jnp.mean(negs)
    pos_thresh = jnp.min(negs) if B > 1 else jnp.mean(poss)
    positive_loss = jnp.sum(jnp.where(poss > pos_thresh, poss ** 2, 0.0))
    negative_loss = jnp.sum(
        jnp.where(negs < neg_thresh, jnp.maximum(margin - negs, 0.0) ** 2, 0.0))
    return positive_loss + negative_loss


if __name__ == "__main__":
    key = jax.random.PRNGKey(0)
    k = jax.random.split(key, 6)

    # Aligned shapes.
    B, D = 8, 256
    anchor = jax.random.normal(k[0], (B, D), dtype=jnp.float32)
    positive = jax.random.normal(k[1], (B, D), dtype=jnp.float32)
    negative = jax.random.normal(k[2], (B, D), dtype=jnp.float32)
    loss = jax.block_until_ready(
        online_contrastive_loss(anchor, positive, negative, margin=0.5))
    ref = _reference(anchor, positive, negative, margin=0.5)
    assert jnp.allclose(loss, ref, rtol=1e-4, atol=1e-5), (loss, ref)

    # Unaligned shapes (exercises in-kernel D-tail mask + B-tail row masking).
    B2, D2 = 6, 200
    a2 = jax.random.normal(k[3], (B2, D2), dtype=jnp.float32)
    p2 = jax.random.normal(k[4], (B2, D2), dtype=jnp.float32)
    n2 = jax.random.normal(k[5], (B2, D2), dtype=jnp.float32)
    loss2 = jax.block_until_ready(
        online_contrastive_loss(a2, p2, n2, margin=0.5))
    ref2 = _reference(a2, p2, n2, margin=0.5)
    assert jnp.allclose(loss2, ref2, rtol=1e-4, atol=1e-5), (loss2, ref2)

    print("KERNEL_OK")
</pallas_src>

<mosaic_0001>
module attributes {stable_mosaic.version = 11 : i64} {
  func.func @_pair_distance_kernel(%arg0: i32, %arg1: i32, %arg2: memref<8x256xf32, #tpu.memory_space<vmem>>, %arg3: memref<8x256xf32, #tpu.memory_space<vmem>>, %arg4: memref<8x256xf32, #tpu.memory_space<vmem>>, %arg5: memref<8x1xf32, #tpu.memory_space<vmem>>, %arg6: memref<8x1xf32, #tpu.memory_space<vmem>>, %arg7: memref<8x128xf32, #tpu.memory_space<vmem>>, %arg8: memref<8x128xf32, #tpu.memory_space<vmem>>, %arg9: memref<8x128xf32, #tpu.memory_space<vmem>>, %arg10: memref<8x128xf32, #tpu.memory_space<vmem>>, %arg11: memref<8x128xf32, #tpu.memory_space<vmem>>) attributes {dimension_semantics = [#tpu.dimension_semantics<parallel>, #tpu.dimension_semantics<arbitrary>], iteration_bounds = array<i64: 1, 1>, scalar_prefetch = 0 : i64, scratch_operands = 5 : i64, tpu.core_type = #tpu.core_type<tc>, window_params = [{transform_indices = @transform_0, window_bounds = array<i64: 8, 256>}, {transform_indices = @transform_1, window_bounds = array<i64: 8, 256>}, {transform_indices = @transform_2, window_bounds = array<i64: 8, 256>}, {transform_indices = @transform_3, window_bounds = array<i64: 8, 1>}, {transform_indices = @transform_4, window_bounds = array<i64: 8, 1>}]} {
    %c0_i32 = arith.constant 0 : i32
    %0 = arith.cmpi eq, %arg1, %c0_i32 : i32
    %1 = arith.extui %0 : i1 to i32
    %c0_i32_0 = arith.constant 0 : i32
    %2 = arith.cmpi ne, %1, %c0_i32_0 : i32
    scf.if %2 {
      %cst = arith.constant 0.000000e+00 : f32
      %44 = vector.broadcast %cst : f32 to vector<8x128xf32>
      %c0_28 = arith.constant 0 : index
      %c0_29 = arith.constant 0 : index
      %45 = vector.load %arg7[%c0_28, %c0_29] : memref<8x128xf32, #tpu.memory_space<vmem>>, vector<8x128xf32>
      tpu.vector_store %arg7[%c0_28, %c0_29], %44 {strides = array<i32>} : memref<8x128xf32, #tpu.memory_space<vmem>>, vector<8x128xf32>,
      %cst_30 = arith.constant 0.000000e+00 : f32
      %46 = vector.broadcast %cst_30 : f32 to vector<8x128xf32>
      %c0_31 = arith.constant 0 : index
      %c0_32 = arith.constant 0 : index
      %47 = vector.load %arg8[%c0_31, %c0_32] : memref<8x128xf32, #tpu.memory_space<vmem>>, vector<8x128xf32>
      tpu.vector_store %arg8[%c0_31, %c0_32], %46 {strides = array<i32>} : memref<8x128xf32, #tpu.memory_space<vmem>>, vector<8x128xf32>,
      %cst_33 = arith.constant 0.000000e+00 : f32
      %48 = vector.broadcast %cst_33 : f32 to vector<8x128xf32>
      %c0_34 = arith.constant 0 : index
      %c0_35 = arith.constant 0 : index
      %49 = vector.load %arg9[%c0_34, %c0_35] : memref<8x128xf32, #tpu.memory_space<vmem>>, vector<8x128xf32>
      tpu.vector_store %arg9[%c0_34, %c0_35], %48 {strides = array<i32>} : memref<8x128xf32, #tpu.memory_space<vmem>>, vector<8x128xf32>,
      %cst_36 = arith.constant 0.000000e+00 : f32
      %50 = vector.broadcast %cst_36 : f32 to vector<8x128xf32>
      %c0_37 = arith.constant 0 : index
      %c0_38 = arith.constant 0 : index
      %51 = vector.load %arg10[%c0_37, %c0_38] : memref<8x128xf32, #tpu.memory_space<vmem>>, vector<8x128xf32>
      tpu.vector_store %arg10[%c0_37, %c0_38], %50 {strides = array<i32>} : memref<8x128xf32, #tpu.memory_space<vmem>>, vector<8x128xf32>,
      %cst_39 = arith.constant 0.000000e+00 : f32
      %52 = vector.broadcast %cst_39 : f32 to vector<8x128xf32>
      %c0_40 = arith.constant 0 : index
      %c0_41 = arith.constant 0 : index
      %53 = vector.load %arg11[%c0_40, %c0_41] : memref<8x128xf32, #tpu.memory_space<vmem>>, vector<8x128xf32>
      tpu.vector_store %arg11[%c0_40, %c0_41], %52 {strides = array<i32>} : memref<8x128xf32, #tpu.memory_space<vmem>>, vector<8x128xf32>,
    } else {
    }
    %c0 = arith.constant 0 : index
    %c0_1 = arith.constant 0 : index
    %3 = vector.load %arg2[%c0, %c0_1] : memref<8x256xf32, #tpu.memory_space<vmem>>, vector<8x256xf32>
    %c0_2 = arith.constant 0 : index
    %c0_3 = arith.constant 0 : index
    %4 = vector.load %arg3[%c0_2, %c0_3] : memref<8x256xf32, #tpu.memory_space<vmem>>, vector<8x256xf32>
    %c0_4 = arith.constant 0 : index
    %c0_5 = arith.constant 0 : index
    %5 = vector.load %arg4[%c0_4, %c0_5] : memref<8x256xf32, #tpu.memory_space<vmem>>, vector<8x256xf32>
    %c0_6 = arith.constant 0 : index
    %c0_7 = arith.constant 0 : index
    %6 = vector.load %arg7[%c0_6, %c0_7] : memref<8x128xf32, #tpu.memory_space<vmem>>, vector<8x128xf32>
    %7 = arith.mulf %3, %4 : vector<8x256xf32>
    %8 = vector.extract_strided_slice %7 {offsets = [0, 0], sizes = [8, 128], strides = [1, 1]} : vector<8x256xf32> to vector<8x128xf32>
    %9 = vector.extract_strided_slice %7 {offsets = [0, 128], sizes = [8, 128], strides = [1, 1]} : vector<8x256xf32> to vector<8x128xf32>
    %10 = arith.addf %8, %9 : vector<8x128xf32>
    %11 = arith.addf %6, %10 : vector<8x128xf32>
    %c0_8 = arith.constant 0 : index
    %c0_9 = arith.constant 0 : index
    %12 = vector.load %arg7[%c0_8, %c0_9] : memref<8x128xf32, #tpu.memory_space<vmem>>, vector<8x128xf32>
    tpu.vector_store %arg7[%c0_8, %c0_9], %11 {strides = array<i32>} : memref<8x128xf32, #tpu.memory_space<vmem>>, vector<8x128xf32>,
    %c0_10 = arith.constant 0 : index
    %c0_11 = arith.constant 0 : index
    %13 = vector.load %arg8[%c0_10, %c0_11] : memref<8x128xf32, #tpu.memory_space<vmem>>, vector<8x128xf32>
    %14 = arith.mulf %3, %5 : vector<8x256xf32>
    %15 = vector.extract_strided_slice %14 {offsets = [0, 0], sizes = [8, 128], strides = [1, 1]} : vector<8x256xf32> to vector<8x128xf32>
    %16 = vector.extract_strided_slice %14 {offsets = [0, 128], sizes = [8, 128], strides = [1, 1]} : vector<8x256xf32> to vector<8x128xf32>
    %17 = arith.addf %15, %16 : vector<8x128xf32>
    %18 = arith.addf %13, %17 : vector<8x128xf32>
    %c0_12 = arith.constant 0 : index
    %c0_13 = arith.constant 0 : index
    %19 = vector.load %arg8[%c0_12, %c0_13] : memref<8x128xf32, #tpu.memory_space<vmem>>, vector<8x128xf32>
    tpu.vector_store %arg8[%c0_12, %c0_13], %18 {strides = array<i32>} : memref<8x128xf32, #tpu.memory_space<vmem>>, vector<8x128xf32>,
    %c0_14 = arith.constant 0 : index
    %c0_15 = arith.constant 0 : index
    %20 = vector.load %arg9[%c0_14, %c0_15] : memref<8x128xf32, #tpu.memory_space<vmem>>, vector<8x128xf32>
    %21 = arith.mulf %3, %3 : vector<8x256xf32>
    %22 = vector.extract_strided_slice %21 {offsets = [0, 0], sizes = [8, 128], strides = [1, 1]} : vector<8x256xf32> to vector<8x128xf32>
    %23 = vector.extract_strided_slice %21 {offsets = [0, 128], sizes = [8, 128], strides = [1, 1]} : vector<8x256xf32> to vector<8x128xf32>
    %24 = arith.addf %22, %23 : vector<8x128xf32>
    %25 = arith.addf %20, %24 : vector<8x128xf32>
    %c0_16 = arith.constant 0 : index
    %c0_17 = arith.constant 0 : index
    %26 = vector.load %arg9[%c0_16, %c0_17] : memref<8x128xf32, #tpu.memory_space<vmem>>, vector<8x128xf32>
    tpu.vector_store %arg9[%c0_16, %c0_17], %25 {strides = array<i32>} : memref<8x128xf32, #tpu.memory_space<vmem>>, vector<8x128xf32>,
    %c0_18 = arith.constant 0 : index
    %c0_19 = arith.constant 0 : index
    %27 = vector.load %arg10[%c0_18, %c0_19] : memref<8x128xf32, #tpu.memory_space<vmem>>, vector<8x128xf32>
    %28 = arith.mulf %4, %4 : vector<8x256xf32>
    %29 = vector.extract_strided_slice %28 {offsets = [0, 0], sizes = [8, 128], strides = [1, 1]} : vector<8x256xf32> to vector<8x128xf32>
    %30 = vector.extract_strided_slice %28 {offsets = [0, 128], sizes = [8, 128], strides = [1, 1]} : vector<8x256xf32> to vector<8x128xf32>
    %31 = arith.addf %29, %30 : vector<8x128xf32>
    %32 = arith.addf %27, %31 : vector<8x128xf32>
    %c0_20 = arith.constant 0 : index
    %c0_21 = arith.constant 0 : index
    %33 = vector.load %arg10[%c0_20, %c0_21] : memref<8x128xf32, #tpu.memory_space<vmem>>, vector<8x128xf32>
    tpu.vector_store %arg10[%c0_20, %c0_21], %32 {strides = array<i32>} : memref<8x128xf32, #tpu.memory_space<vmem>>, vector<8x128xf32>,
    %c0_22 = arith.constant 0 : index
    %c0_23 = arith.constant 0 : index
    %34 = vector.load %arg11[%c0_22, %c0_23] : memref<8x128xf32, #tpu.memory_space<vmem>>, vector<8x128xf32>
    %35 = arith.mulf %5, %5 : vector<8x256xf32>
    %36 = vector.extract_strided_slice %35 {offsets = [0, 0], sizes = [8, 128], strides = [1, 1]} : vector<8x256xf32> to vector<8x128xf32>
    %37 = vector.extract_strided_slice %35 {offsets = [0, 128], sizes = [8, 128], strides = [1, 1]} : vector<8x256xf32> to vector<8x128xf32>
    %38 = arith.addf %36, %37 : vector<8x128xf32>
    %39 = arith.addf %34, %38 : vector<8x128xf32>
    %c0_24 = arith.constant 0 : index
    %c0_25 = arith.constant 0 : index
    %40 = vector.load %arg11[%c0_24, %c0_25] : memref<8x128xf32, #tpu.memory_space<vmem>>, vector<8x128xf32>
    tpu.vector_store %arg11[%c0_24, %c0_25], %39 {strides = array<i32>} : memref<8x128xf32, #tpu.memory_space<vmem>>, vector<8x128xf32>,
    %c0_i32_26 = arith.constant 0 : i32
    %41 = arith.cmpi eq, %arg1, %c0_i32_26 : i32
    %42 = arith.extui %41 : i1 to i32
    %c0_i32_27 = arith.constant 0 : i32
    %43 = arith.cmpi ne, %42, %c0_i32_27 : i32
    scf.if %43 {
      %c0_28 = arith.constant 0 : index
      %c0_29 = arith.constant 0 : index
      %44 = vector.load %arg7[%c0_28, %c0_29] : memref<8x128xf32, #tpu.memory_space<vmem>>, vector<8x128xf32>
      %cst = arith.constant dense<0.000000e+00> : vector<8xf32>
      %45 = vector.multi_reduction <add>, %44, %cst [1] : vector<8x128xf32> to vector<8xf32>
      %46 = vector.shape_cast %45 : vector<8xf32> to vector<8x1xf32>
      %c0_30 = arith.constant 0 : index
      %c0_31 = arith.constant 0 : index
      %47 = vector.load %arg8[%c0_30, %c0_31] : memref<8x128xf32, #tpu.memory_space<vmem>>, vector<8x128xf32>
      %cst_32 = arith.constant dense<0.000000e+00> : vector<8xf32>
      %48 = vector.multi_reduction <add>, %47, %cst_32 [1] : vector<8x128xf32> to vector<8xf32>
      %49 = vector.shape_cast %48 : vector<8xf32> to vector<8x1xf32>
      %c0_33 = arith.constant 0 : index
      %c0_34 = arith.constant 0 : index
      %50 = vector.load %arg9[%c0_33, %c0_34] : memref<8x128xf32, #tpu.memory_space<vmem>>, vector<8x128xf32>
      %cst_35 = arith.constant dense<0.000000e+00> : vector<8xf32>
      %51 = vector.multi_reduction <add>, %50, %cst_35 [1] : vector<8x128xf32> to vector<8xf32>
      %52 = vector.shape_cast %51 : vector<8xf32> to vector<8x1xf32>
      %c0_36 = arith.constant 0 : index
      %c0_37 = arith.constant 0 : index
      %53 = vector.load %arg10[%c0_36, %c0_37] : memref<8x128xf32, #tpu.memory_space<vmem>>, vector<8x128xf32>
      %cst_38 = arith.constant dense<0.000000e+00> : vector<8xf32>
      %54 = vector.multi_reduction <add>, %53, %cst_38 [1] : vector<8x128xf32> to vector<8xf32>
      %55 = vector.shape_cast %54 : vector<8xf32> to vector<8x1xf32>
      %c0_39 = arith.constant 0 : index
      %c0_40 = arith.constant 0 : index
      %56 = vector.load %arg11[%c0_39, %c0_40] : memref<8x128xf32, #tpu.memory_space<vmem>>, vector<8x128xf32>
      %cst_41 = arith.constant dense<0.000000e+00> : vector<8xf32>
      %57 = vector.multi_reduction <add>, %56, %cst_41 [1] : vector<8x128xf32> to vector<8xf32>
      %58 = vector.shape_cast %57 : vector<8xf32> to vector<8x1xf32>
      %59 = arith.mulf %52, %55 : vector<8x1xf32>
      %cst_42 = arith.constant 1.000000e-16 : f32
      %60 = vector.broadcast %cst_42 : f32 to vector<8x1xf32>
      %61 = arith.maximumf %59, %60 : vector<8x1xf32>
      %62 = math.rsqrt %61 : vector<8x1xf32>
      %63 = arith.mulf %46, %62 : vector<8x1xf32>
      %cst_43 = arith.constant 1.000000e+00 : f32
      %64 = vector.broadcast %cst_43 : f32 to vector<8x1xf32>
      %65 = arith.subf %64, %63 : vector<8x1xf32>
      %c0_44 = arith.constant 0 : index
      %c0_45 = arith.constant 0 : index
      %66 = vector.load %arg5[%c0_44, %c0_45] : memref<8x1xf32, #tpu.memory_space<vmem>>, vector<8x1xf32>
      tpu.vector_store %arg5[%c0_44, %c0_45], %65 {strides = array<i32>} : memref<8x1xf32, #tpu.memory_space<vmem>>, vector<8x1xf32>,
      %67 = arith.mulf %52, %58 : vector<8x1xf32>
      %cst_46 = arith.constant 1.000000e-16 : f32
      %68 = vector.broadcast %cst_46 : f32 to vector<8x1xf32>
      %69 = arith.maximumf %67, %68 : vector<8x1xf32>
      %70 = math.rsqrt %69 : vector<8x1xf32>
      %71 = arith.mulf %49, %70 : vector<8x1xf32>
      %cst_47 = arith.constant 1.000000e+00 : f32
      %72 = vector.broadcast %cst_47 : f32 to vector<8x1xf32>
      %73 = arith.subf %72, %71 : vector<8x1xf32>
      %c0_48 = arith.constant 0 : index
      %c0_49 = arith.constant 0 : index
      %74 = vector.load %arg6[%c0_48, %c0_49] : memref<8x1xf32, #tpu.memory_space<vmem>>, vector<8x1xf32>
      tpu.vector_store %arg6[%c0_48, %c0_49], %73 {strides = array<i32>} : memref<8x1xf32, #tpu.memory_space<vmem>>, vector<8x1xf32>,
    } else {
    }
    return
  }
  func.func @transform_0(%arg0: i32, %arg1: i32) -> (i32, i32) {
    %c0_i32 = arith.constant 0 : i32
    return %arg0, %arg1 : i32, i32
  }
  func.func @transform_1(%arg0: i32, %arg1: i32) -> (i32, i32) {
    %c0_i32 = arith.constant 0 : i32
    return %arg0, %arg1 : i32, i32
  }
  func.func @transform_2(%arg0: i32, %arg1: i32) -> (i32, i32) {
    %c0_i32 = arith.constant 0 : i32
    return %arg0, %arg1 : i32, i32
  }
  func.func @transform_3(%arg0: i32, %arg1: i32) -> (i32, i32) {
    %c0_i32 = arith.constant 0 : i32
    %c0_i32_0 = arith.constant 0 : i32
    return %arg0, %c0_i32 : i32, i32
  }
  func.func @transform_4(%arg0: i32, %arg1: i32) -> (i32, i32) {
    %c0_i32 = arith.constant 0 : i32
    %c0_i32_0 = arith.constant 0 : i32
    return %arg0, %c0_i32 : i32, i32
  }
}

</mosaic_0001>

<bundles_post_ra>
// kernel: tpu_custom_call.1
= control target key start
LH: loop header
LB: loop body
LE: loop exit
PB: predicated region body
PF: predicated region fallthrough
CT: control target
= control target key end

     0   :  { %10 = vsyncpa [#allocation8], 0  ;;  %s284_s0 = inlined_call_operand.hbm [shape: f32[8,256], index: 0, kind: input, shape index: {}]   ;;  %s285_s1 = inlined_call_operand.hbm [shape: f32[8,256], index: 1, kind: input, shape index: {}]   ;;  %s286_s2 = inlined_call_operand.hbm [shape: f32[8,256], index: 2, kind: input, shape index: {}]   ;;  %s287_s3 = inlined_call_operand.vmem [shape: f32[8,1], index: 3, kind: output, shape index: {0}]   ;;  %s288_s4 = inlined_call_operand.vmem [shape: f32[8,1], index: 4, kind: output, shape index: {1}]  }
   0x1   :  { %11 = vsyncpa [#allocation10], 0  ;;  %s214_s15 = smov [#allocation9]   ;;  %s215_s17 = smov [#allocation7]  }
   0x2   :  { %s28_s16 = sshll.u32 %s214_s15, 4  ;;  %s18_s18 = sshll.u32 %s215_s17, 4  ;;  %s29_s16 = int_to_ptr.vmem [resolvable:$true] %s28_s16  ;;  %s19_s18 = int_to_ptr.vmem [resolvable:$true] %s18_s18 }
   0x3   :  { %s144_s21 = scalar_lea.hbm %s285_s1, 256 }
   0x4   :  { %p145_p0 = scmp.ne.s32.totalorder %s285_s1, %s144_s21  ;;  %p148_p1 = scmp.lt.u32.totalorder %s144_s21, %s285_s1 }
   0x6   :  { %p150_p2 = pnand %p148_p1, %p145_p0 }
   0x8   :  { %153 = shalt.err (!%p150_p2)
}
   0x9   :  { %s154_s26 = scalar_lea.vmem %s29_s16, 256  ;;  %p159_p4 = scmp.lt.s32.totalorder %s29_s16, %s29_s16 }
   0xa   :  { %p155_p3 = scmp.ne.s32.totalorder %s29_s16, %s154_s26  ;;  %p160_p5 = scmp.lt.s32.totalorder %s154_s26, %s154_s26 }
   0xc   :  { %p161_p6 = por %p160_p5, %p159_p4 }
   0xe   :  { %p162_p7 = pnand %p161_p6, %p155_p3 }
  0x10   :  { %165 = shalt.err (!%p162_p7)
}
  0x11   :  { %31 = dma.hbm_to_vmem [thread:$0]  %s285_s1, 256, %s29_s16, [#allocation10]  }
  0x12   :  { %s166_s5 = scalar_lea.hbm %s284_s0, 256 }
  0x13   :  { %p167_p8 = scmp.ne.s32.totalorder %s284_s0, %s166_s5  ;;  %p170_p9 = scmp.lt.u32.totalorder %s166_s5, %s284_s0 }
  0x15   :  { %p172_p10 = pnand %p170_p9, %p167_p8 }
  0x17   :  { %175 = shalt.err (!%p172_p10)
}
  0x18   :  { %s176_s10 = scalar_lea.vmem %s19_s18, 256  ;;  %p181_p12 = scmp.lt.s32.totalorder %s19_s18, %s19_s18 }
  0x19   :  { %p177_p11 = scmp.ne.s32.totalorder %s19_s18, %s176_s10  ;;  %p182_p13 = scmp.lt.s32.totalorder %s176_s10, %s176_s10 }
  0x1b   :  { %p183_p0 = por %p182_p13, %p181_p12 }
  0x1d   :  { %p184_p1 = pnand %p183_p0, %p177_p11 }
  0x1f   :  { %187 = shalt.err (!%p184_p1)
}
  0x20   :  { %21 = dma.hbm_to_vmem [thread:$0]  %s284_s0, 256, %s19_s18, [#allocation8]  }
  0x21   :  { %s216_s12 = smov [#allocation11]   ;;  %s188_s16 = scalar_lea.hbm %s286_s2, 256 }
  0x22   :  { %s38_s13 = sshll.u32 %s216_s12, 4  ;;  %p189_p2 = scmp.ne.s32.totalorder %s286_s2, %s188_s16  ;;  %s39_s13 = int_to_ptr.vmem [resolvable:$true] %s38_s13 }
  0x23   :  { %p192_p3 = scmp.lt.u32.totalorder %s188_s16, %s286_s2 }
  0x25   :  { %p194_p4 = pnand %p192_p3, %p189_p2 }
  0x27   :  { %197 = shalt.err (!%p194_p4)
}
  0x28   :  { %s198_s22 = scalar_lea.vmem %s39_s13, 256  ;;  %p203_p6 = scmp.lt.s32.totalorder %s39_s13, %s39_s13 }
  0x29   :  { %p199_p5 = scmp.ne.s32.totalorder %s39_s13, %s198_s22  ;;  %p204_p7 = scmp.lt.s32.totalorder %s198_s22, %s198_s22 }
  0x2b   :  { %p205_p8 = por %p204_p7, %p203_p6 }
  0x2d   :  { %p206_p9 = pnand %p205_p8, %p199_p5 }
  0x2f   :  { %209 = shalt.err (!%p206_p9)
}
  0x30   :  { %41 = dma.hbm_to_vmem [thread:$0]  %s286_s2, 256, %s39_s13, [#allocation10]  }
  0x31   :  { %210 = dma.done.wait [#allocation8], 256  }
  0x32   :  { %211 = vsyncadd [#allocation8], 4294967040 }
  0x33   :  { %212 = dma.done.wait [#allocation10], 512  }
  0x34   :  { %213 = vsyncadd [#allocation10], 4294966784  ;;  %v64_v0 = vld [vmem:[#allocation11] sm:$0xff]  ;;  %v65_v1 = vld [vmem:[#allocation11 + $0x8] sm:$0xff]  ;;  %vm119_vm0 = vcmask 7168  }
  0x35   :  { %v60_v2 = vld [vmem:[#allocation7] sm:$0xff]  ;;  %v91_v3 = vmul.f32 %v64_v0, %v64_v0  ;;  %v92_v4 = vmul.f32 %v65_v1, %v65_v1  ;;  %v61_v5 = vld [vmem:[#allocation7 + $0x8] sm:$0xff]  ;;  %v62_v7 = vld [vmem:[#allocation9] sm:$0xff] }
  0x36   :  { %v79_v6 = vmul.f32 %v60_v2, %v60_v2  ;;  %v63_v8 = vld [vmem:[#allocation9 + $0x8] sm:$0xff]  ;;  %v80_v9 = vmul.f32 %v61_v5, %v61_v5  ;;  %v85_v10 = vmul.f32 %v62_v7, %v62_v7  ;;  %v67_v13 = vmul.f32 %v62_v7, %v60_v2 }
  0x37   :  { %v86_v11 = vmul.f32 %v63_v8, %v63_v8  ;;  %v93_v12 = vadd.f32 %v92_v4, %v91_v3  ;;  %v68_v14 = vmul.f32 %v63_v8, %v61_v5  ;;  %v73_v18 = vmul.f32 %v64_v0, %v60_v2 }
  0x38   :  { %v81_v15 = vadd.f32 %v80_v9, %v79_v6  ;;  %v74_v19 = vmul.f32 %v65_v1, %v61_v5 }
  0x39   :  { %112 = vadd.xlane.f32.xlu1 %v93_v12  ;;  %v69_v16 = vadd.f32 %v68_v14, %v67_v13  ;;  %v87_v17 = vadd.f32 %v86_v11, %v85_v10 }
  0x3a   :  { %106 = vadd.xlane.f32.xlu0 %v81_v15  ;;  %v75_v20 = vadd.f32 %v74_v19, %v73_v18 }
  0x3d   :  { %100 = vadd.xlane.f32.xlu1 %v69_v16 }
  0x3e   :  { %109 = vadd.xlane.f32.xlu0 %v87_v17 }
  0x42   :  { %103 = vadd.xlane.f32.xlu0 %v75_v20 }
  0xc6   :  { %v113_v21 = vpop.xlane.xlu1 %112 }
  0xc7   :  { %v107_v22 = vpop.xlane.xlu0 %106 }
  0xc8   :  { %v121_v23 = vmul.f32 %v113_v21, %v107_v22 }
  0xca   :  { %v122_v24 = vmax.f32 %v121_v23, 1e-16  ;;  %v101_v31 = vpop.xlane.xlu1 %100 }
  0xcb   :  { %v110_v25 = vpop.xlane.xlu0 %109 }
  0xcc   :  { %140 = vrsqrt.f32 %v122_v24  ;;  %v114_v26 = vmul.f32 %v110_v25, %v107_v22 }
  0xce   :  { %v115_v27 = vmax.f32 %v114_v26, 1e-16 }
  0xcf   :  { %v104_v28 = vpop.xlane.xlu0 %103 }
  0xd0   :  { %142 = vrsqrt.f32 %v115_v27 }
  0xd6   :  { %v141_v29 = vpop.eup %140 }
  0xd7   :  { %v124_v30 = vmul.f32 %v141_v29, %v104_v28 }
  0xd9   :  { %v125_v32 = vsub.f32 1.0, %v124_v30 }
  0xda   :  { %v143_v33 = vpop.eup %142 }
  0xdb   :  { %126 = vst.msk [vmem:[%s288_s4] sm:$0xff] %vm119_vm0, %v125_v32  ;;  %v117_v34 = vmul.f32 %v143_v33, %v101_v31 }
  0xdd   :  { %v118_v35 = vsub.f32 1.0, %v117_v34 }
  0xdf   :  { %120 = vst.msk [vmem:[%s287_s3] sm:$0xff] %vm119_vm0, %v118_v35 }
  0xe0   :  { %135 = vsyncpa [#allocation8], 1 }
  0xe1   :  { %136 = vsyncpa [#allocation10], 1 }

</bundles_post_ra>
